<compile_context>
chip_gen: v7x
topology: tpu7x:2x2x1
jax: 0.10.0
libtpu: 0.0.40
codegen_flags: <defaults>
</compile_context>

<pallas_src>
import functools

import jax
import jax.numpy as jnp
import numpy as np
from jax.experimental import pallas as pl
from jax.experimental.pallas import tpu as pltpu


def _round_up(x, m):
    return ((x + m - 1) // m) * m


# ------------------------------ Pallas kernels ------------------------------ #
def _transform_kernel(x_ref, w_ref, y_ref):
    """Y[i] = X[i] @ W1   (bf16 MXU operands, f32 accumulate, bf16 store)."""
    y_ref[...] = jnp.dot(x_ref[...], w_ref[...],
                         preferred_element_type=jnp.float32).astype(y_ref.dtype)


def _propagate_fuse_w2_kernel(tk, a_ref, xw_ref, b_ref, w2_ref, out_ref, acc_ref):
    """out[i] = ( relu( sum_k A[i,k] @ XW1[k*tk:(k+1)*tk] + b1 ) ) @ W2.

    XW1 is fully VMEM-resident (constant index_map); this kernel slices its k-th
    row panel.  The W2 transform of GCN layer 2 is fused into the finalize.
    """
    k = pl.program_id(1)

    @pl.when(k == 0)
    def _init():
        acc_ref[...] = jnp.zeros_like(acc_ref)

    start = pl.multiple_of(k * tk, tk)
    acc_ref[...] += jnp.dot(a_ref[...], xw_ref[pl.ds(start, tk), :],
                            preferred_element_type=jnp.float32)

    @pl.when(k == pl.num_programs(1) - 1)
    def _finalize():
        h1 = jnp.maximum(acc_ref[...] + b_ref[...], 0.0).astype(jnp.bfloat16)
        out_ref[...] = jnp.dot(h1, w2_ref[...],
                               preferred_element_type=jnp.float32).astype(out_ref.dtype)


def _propagate_pool_fc_kernel(tk, a_ref, xw_ref, b_ref, pool_ref, wfc_ref, bfc_ref,
                              out_ref, acc_ref, pool_acc_ref):
    """Fused layer-2 propagate + global_mean_pool + Linear.

      H2[i]    = relu( sum_k A[i,k] @ XW2[k*tk:(k+1)*tk] + b2 )      (per row tile)
      pool_acc += pool[:, rows_i] @ H2[i]                            (f32 scratch)
      out      = pool_acc @ Wfc + bfc                                (last step)
    """
    i = pl.program_id(0)
    k = pl.program_id(1)
    last_i = pl.num_programs(0) - 1
    last_k = pl.num_programs(1) - 1

    @pl.when(jnp.logical_and(i == 0, k == 0))
    def _init_pool():
        pool_acc_ref[...] = jnp.zeros_like(pool_acc_ref)

    @pl.when(k == 0)
    def _init_acc():
        acc_ref[...] = jnp.zeros_like(acc_ref)

    start = pl.multiple_of(k * tk, tk)
    acc_ref[...] += jnp.dot(a_ref[...], xw_ref[pl.ds(start, tk), :],
                            preferred_element_type=jnp.float32)

    @pl.when(k == last_k)
    def _row_finalize():
        h2 = jnp.maximum(acc_ref[...] + b_ref[...], 0.0)           # f32 (TM, HID)
        # Pool matmul kept in f32 (review numeric note); tiny (8 x TM x 128).
        pool_acc_ref[...] += jnp.dot(pool_ref[...], h2,
                                     preferred_element_type=jnp.float32)

    @pl.when(jnp.logical_and(i == last_i, k == last_k))
    def _final():
        out_ref[...] = (jnp.dot(pool_acc_ref[...], wfc_ref[...],
                                preferred_element_type=jnp.float32)
                        + bfc_ref[...])


# --------------------------- pallas_call wrappers --------------------------- #
def _compiler_params(dim_sem, vmem_limit):
    kwargs = dict(dimension_semantics=dim_sem)
    if vmem_limit is not None:
        kwargs["vmem_limit_bytes"] = vmem_limit
    return pltpu.CompilerParams(**kwargs)


def _transform(x, w, *, tm, vmem_limit=None):
    n, c = x.shape
    h = w.shape[1]
    cost = pl.CostEstimate(flops=2 * n * c * h, transcendentals=0,
                           bytes_accessed=n * c * 2 + c * h * 2 + n * h * 2)
    return pl.pallas_call(
        _transform_kernel,
        out_shape=jax.ShapeDtypeStruct((n, h), jnp.bfloat16),
        grid_spec=pltpu.PrefetchScalarGridSpec(
            num_scalar_prefetch=0,
            grid=(n // tm,),
            in_specs=[pl.BlockSpec((tm, c), lambda i: (i, 0)),
                      pl.BlockSpec((c, h), lambda i: (0, 0))],       # resident W1
            out_specs=pl.BlockSpec((tm, h), lambda i: (i, 0)),
        ),
        compiler_params=_compiler_params(("parallel",), vmem_limit),
        cost_estimate=cost,
    )(x, w)


def _propagate_fuse_w2(a, xw, b, w2, *, tm, tk, vmem_limit=None):
    n = a.shape[0]
    h = xw.shape[1]
    cost = pl.CostEstimate(
        flops=2 * n * n * h + 2 * n * h * h, transcendentals=0,
        bytes_accessed=n * n * 2 + n * h * 2 + h * h * 2 + h * 4 + n * h * 2)
    kernel = functools.partial(_propagate_fuse_w2_kernel, tk)
    return pl.pallas_call(
        kernel,
        out_shape=jax.ShapeDtypeStruct((n, h), jnp.bfloat16),
        grid_spec=pltpu.PrefetchScalarGridSpec(
            num_scalar_prefetch=0,
            grid=(n // tm, n // tk),                 # reduction (k) axis last
            in_specs=[pl.BlockSpec((tm, tk), lambda i, k: (i, k)),   # A tile
                      pl.BlockSpec((n, h), lambda i, k: (0, 0)),     # resident XW1
                      pl.BlockSpec((1, h), lambda i, k: (0, 0)),     # resident b1
                      pl.BlockSpec((h, h), lambda i, k: (0, 0))],    # resident W2
            out_specs=pl.BlockSpec((tm, h), lambda i, k: (i, 0)),
            scratch_shapes=[pltpu.VMEM((tm, h), jnp.float32)],       # f32 accumulator
        ),
        compiler_params=_compiler_params(("parallel", "arbitrary"), vmem_limit),
        cost_estimate=cost,
    )(a, xw, b, w2)


def _propagate_pool_fc(a, xw, b, pool, wfc, bfc, *, tm, tk, vmem_limit=None):
    n = a.shape[0]
    h = xw.shape[1]
    g = pool.shape[0]
    o = wfc.shape[1]
    cost = pl.CostEstimate(
        flops=2 * n * n * h + 2 * g * n * h + 2 * g * h * o, transcendentals=0,
        bytes_accessed=n * n * 2 + n * h * 2 + g * n * 4 + h * o * 4 + g * o * 4)
    kernel = functools.partial(_propagate_pool_fc_kernel, tk)
    # NOTE: row axis is "arbitrary" here because the pooled accumulator / output
    # are carried across row tiles; on v7x a per-row-tile partial-sums variant
    # would preserve 2-TC sharding of that axis.
    return pl.pallas_call(
        kernel,
        out_shape=jax.ShapeDtypeStruct((g, o), jnp.float32),
        grid_spec=pltpu.PrefetchScalarGridSpec(
            num_scalar_prefetch=0,
            grid=(n // tm, n // tk),
            in_specs=[pl.BlockSpec((tm, tk), lambda i, k: (i, k)),   # A tile
                      pl.BlockSpec((n, h), lambda i, k: (0, 0)),     # resident XW2
                      pl.BlockSpec((1, h), lambda i, k: (0, 0)),     # resident b2
                      pl.BlockSpec((g, tm), lambda i, k: (0, i)),    # pool cols of tile i
                      pl.BlockSpec((h, o), lambda i, k: (0, 0)),     # resident Wfc (f32)
                      pl.BlockSpec((1, o), lambda i, k: (0, 0))],    # resident bfc (f32)
            out_specs=pl.BlockSpec((g, o), lambda i, k: (0, 0)),
            scratch_shapes=[pltpu.VMEM((tm, h), jnp.float32),        # row accumulator
                            pltpu.VMEM((g, h), jnp.float32)],        # pooled accumulator
        ),
        compiler_params=_compiler_params(("arbitrary", "arbitrary"), vmem_limit),
        cost_estimate=cost,
    )(a, xw, b, pool, wfc, bfc)


# ------------------------- one-time constant preparation ---------------------- #
def build_normalized_adjacency(edge_index, num_nodes):
    """Dense D^-1/2 (A + I) D^-1/2, matching GCNConv(add_self_loops=True)."""
    src, dst = edge_index
    a = jnp.zeros((num_nodes, num_nodes), jnp.float32)
    a = a.at[dst, src].add(1.0)                        # message: src -> dst
    a = a + jnp.eye(num_nodes, dtype=jnp.float32)      # self loops
    deg = jnp.sum(a, axis=1)
    dinv = jnp.where(deg > 0, 1.0 / jnp.sqrt(deg), 0.0)
    return a * dinv[:, None] * dinv[None, :]


def build_mean_pool_matrix(batch, num_graphs):
    """pool[g, n] = (batch[n] == g) / |{n : batch[n] == g}|."""
    onehot = (batch[None, :] == jnp.arange(num_graphs)[:, None]).astype(jnp.float32)
    counts = jnp.maximum(jnp.sum(onehot, axis=1, keepdims=True), 1.0)
    return onehot / counts


def prepare_constants(edge_index, batch, num_nodes, num_graphs,
                      w1, b1, w2, b2, wfc, bfc):
    """Build + pad + cast all per-model constants ONCE (outside the jitted forward)."""
    n = num_nodes
    c_in, hid = w1.shape
    o = wfc.shape[1]
    g = num_graphs

    # Tile selection (review items 4/7): big reduction tile for realistic N,
    # TM chosen so realistic N gets >= 2 row tiles (keeps both v7x TCs busy).
    if n >= 2048:
        tm = 512
    elif n >= 256:
        tm = 256
    else:
        tm = 128
    tk = 2048 if n >= 4096 else tm
    n_pad = _round_up(n, max(tm, tk))
    c_pad = _round_up(c_in, 128)
    hid_pad = _round_up(hid, 128)
    o_pad = _round_up(o, 128)
    g_pad = _round_up(g, 8)

    # VMEM budget (review items on v5e/v6e/v7x budgeting): resident XW (x2 bufs,
    # conservative) + double-buffered A tile + accumulators + resident weights.
    vmem_est = (2 * tm * tk * 2                       # A tile, bf16, double-buffered
                + 2 * n_pad * hid_pad * 2             # resident XW, bf16
                + tm * hid_pad * 4                    # f32 row accumulator
                + 2 * tm * hid_pad * 2                # output block, bf16
                + hid_pad * hid_pad * 2               # resident W2
                + 2 * g_pad * tm * 4                  # pool tile, f32
                + hid_pad * o_pad * 4 + g_pad * hid_pad * 4 + g_pad * o_pad * 4)
    vmem_limit = None
    if vmem_est > 12 * (1 << 20):                     # beyond v5e's 16 MiB default scoped
        vmem_limit = min(int(vmem_est * 1.3), 48 * (1 << 20))   # stay inside v7x 64 MiB

    a_hat = build_normalized_adjacency(edge_index, n)
    pool = build_mean_pool_matrix(batch, g)

    bf16 = jnp.bfloat16
    a_p = jnp.pad(a_hat, ((0, n_pad - n), (0, n_pad - n))).astype(bf16)
    # TODO(synk): on v7x, a_hat could be stored as fp8 (e4m3) to halve the dominant
    # A stream; kept bf16 here for portability across v5e/v6e.
    pool_p = jnp.pad(pool, ((0, g_pad - g), (0, n_pad - n))).astype(jnp.float32)
    w1_p = jnp.pad(w1, ((0, c_pad - c_in), (0, hid_pad - hid))).astype(bf16)
    b1_p = jnp.pad(b1, ((0, 0), (0, hid_pad - hid))).astype(jnp.float32)
    w2_p = jnp.pad(w2, ((0, hid_pad - hid), (0, hid_pad - hid))).astype(bf16)
    b2_p = jnp.pad(b2, ((0, 0), (0, hid_pad - hid))).astype(jnp.float32)
    wfc_p = jnp.pad(wfc, ((0, hid_pad - hid), (0, o_pad - o))).astype(jnp.float32)
    bfc_p = jnp.pad(bfc, ((0, 0), (0, o_pad - o))).astype(jnp.float32)

    consts = (a_p, w1_p, b1_p, w2_p, b2_p, pool_p, wfc_p, bfc_p)
    for c in consts:
        c.block_until_ready()

    cfg = dict(n=n, c_in=c_in, g=g, o=o, tm=tm, tk=tk,
               n_pad=n_pad, c_pad=c_pad, vmem_limit=vmem_limit)
    return cfg, consts


# -------------------------------- Full forward ------------------------------- #
def make_forward(cfg):
    tm, tk = cfg["tm"], cfg["tk"]
    n, c_in = cfg["n"], cfg["c_in"]
    n_pad, c_pad = cfg["n_pad"], cfg["c_pad"]
    g, o = cfg["g"], cfg["o"]
    vmem_limit = cfg["vmem_limit"]

    @jax.jit
    def forward(x, a_p, w1_p, b1_p, w2_p, b2_p, pool_p, wfc_p, bfc_p):
        # Only the per-call input x is padded/cast here; all constants were
        # padded once in prepare_constants (review item 1).
        x_p = jnp.pad(x, ((0, n_pad - n), (0, c_pad - c_in))).astype(jnp.bfloat16)

        # XW1 = X @ W1
        xw1 = _transform(x_p, w1_p, tm=tm, vmem_limit=vmem_limit)
        # XW2 = relu(A @ XW1 + b1) @ W2   (layer-1 propagate, W2 fused)
        xw2 = _propagate_fuse_w2(a_p, xw1, b1_p, w2_p,
                                 tm=tm, tk=tk, vmem_limit=vmem_limit)
        # out = pool @ relu(A @ XW2 + b2) @ Wfc + bfc   (propagate-2 + pool + FC fused)
        out_p = _propagate_pool_fc(a_p, xw2, b2_p, pool_p, wfc_p, bfc_p,
                                   tm=tm, tk=tk, vmem_limit=vmem_limit)
        return out_p[:g, :o]

    return forward


def reference_forward(a_hat, x, w1, b1, w2, b2, pool, wfc, bfc):
    h1 = jnp.maximum(a_hat @ (x @ w1) + b1, 0.0)
    h2 = jnp.maximum(a_hat @ (h1 @ w2) + b2, 0.0)
    return (pool @ h2) @ wfc + bfc


# ----------------------------------- Main ------------------------------------ #
# TODO(synk): edge_index -> dense normalized adjacency (and batch -> pool matrix)
# is scatter-add glue kept in plain JAX; a block-sparse A via scalar prefetch is
# the scalable follow-up for very large graphs.
if __name__ == "__main__":
    IN_CH, HID, OUT_CH = 5, 64, 2
    NUM_NODES_PER_GRAPH, NUM_GRAPHS = 8, 2
    N = NUM_NODES_PER_GRAPH * NUM_GRAPHS

    key = jax.random.PRNGKey(0)
    k_x, k_w1, k_b1, k_w2, k_b2, k_wfc, k_bfc = jax.random.split(key, 7)

    # Node features.
    x = jax.random.normal(k_x, (N, IN_CH), jnp.float32)

    # Deterministic graph: a ring within each graph (undirected -> both dirs).
    edges = []
    for gidx in range(NUM_GRAPHS):
        base = gidx * NUM_NODES_PER_GRAPH
        for i in range(NUM_NODES_PER_GRAPH):
            u = base + i
            v = base + (i + 1) % NUM_NODES_PER_GRAPH
            edges.append((u, v))
            edges.append((v, u))
    edge_index = jnp.asarray(np.array(edges, dtype=np.int32).T)   # (2, E)

    # Batch assignment: first 8 nodes -> graph 0, next 8 -> graph 1.
    batch = jnp.asarray(
        np.repeat(np.arange(NUM_GRAPHS), NUM_NODES_PER_GRAPH).astype(np.int32))

    # Deterministic parameter init (glorot-ish), stored as (in, out).
    w1 = jax.random.normal(k_w1, (IN_CH, HID), jnp.float32) / jnp.sqrt(IN_CH)
    b1 = jax.random.normal(k_b1, (1, HID), jnp.float32) * 0.01
    w2 = jax.random.normal(k_w2, (HID, HID), jnp.float32) / jnp.sqrt(HID)
    b2 = jax.random.normal(k_b2, (1, HID), jnp.float32) * 0.01
    wfc = jax.random.normal(k_wfc, (HID, OUT_CH), jnp.float32) / jnp.sqrt(HID)
    bfc = jax.random.normal(k_bfc, (1, OUT_CH), jnp.float32) * 0.01

    # One-time constant preparation (padding/casting hoisted out of the forward).
    cfg, consts = prepare_constants(edge_index, batch, N, NUM_GRAPHS,
                                    w1, b1, w2, b2, wfc, bfc)
    forward = make_forward(cfg)

    out = forward(x, *consts)
    out = jax.block_until_ready(out)

    a_hat = build_normalized_adjacency(edge_index, N)
    pool = build_mean_pool_matrix(batch, NUM_GRAPHS)
    ref = reference_forward(a_hat, x, w1, b1, w2, b2, pool, wfc, bfc)

    # bf16 MXU operands with f32 accumulation -> compare with loose tolerance.
    np.testing.assert_allclose(np.asarray(out), np.asarray(ref),
                               rtol=5e-2, atol=5e-2)
    assert out.shape == (NUM_GRAPHS, OUT_CH)
    print("KERNEL_OK")
</pallas_src>

<mosaic_0001>
module attributes {stable_mosaic.version = 11 : i64} {
  func.func @_transform_kernel(%arg0: i32, %arg1: memref<128x128xbf16, #tpu.memory_space<vmem>>, %arg2: memref<128x128xbf16, #tpu.memory_space<vmem>>, %arg3: memref<128x128xbf16, #tpu.memory_space<vmem>>) attributes {dimension_semantics = [#tpu.dimension_semantics<parallel>], iteration_bounds = array<i64: 1>, scalar_prefetch = 0 : i64, scratch_operands = 0 : i64, tpu.core_type = #tpu.core_type<tc>, window_params = [{transform_indices = @transform_0, window_bounds = array<i64: 128, 128>}, {pipeline_mode = #tpu.pipeline_mode<synchronous>, transform_indices = @transform_1, window_bounds = array<i64: 128, 128>}, {transform_indices = @transform_2, window_bounds = array<i64: 128, 128>}]} {
    %c0 = arith.constant 0 : index
    %c0_0 = arith.constant 0 : index
    %0 = vector.load %arg1[%c0, %c0_0] : memref<128x128xbf16, #tpu.memory_space<vmem>>, vector<128x128xbf16>
    %c0_1 = arith.constant 0 : index
    %c0_2 = arith.constant 0 : index
    %1 = vector.load %arg2[%c0_1, %c0_2] : memref<128x128xbf16, #tpu.memory_space<vmem>>, vector<128x128xbf16>
    %cst = arith.constant dense<0.000000e+00> : vector<128x128xf32>
    %2 = tpu.matmul %0, %1, %cst {dimension_numbers = #tpu.dot_dimension_numbers<[1], [0], [0], [1], [0, 0, 1, 1], [], []>} : vector<128x128xbf16>, vector<128x128xbf16>, vector<128x128xf32> -> vector<128x128xf32>
    %3 = arith.truncf %2 : vector<128x128xf32> to vector<128x128xbf16>
    %c0_3 = arith.constant 0 : index
    %c0_4 = arith.constant 0 : index
    %4 = vector.load %arg3[%c0_3, %c0_4] : memref<128x128xbf16, #tpu.memory_space<vmem>>, vector<128x128xbf16>
    tpu.vector_store %arg3[%c0_3, %c0_4], %3 {strides = array<i32>} : memref<128x128xbf16, #tpu.memory_space<vmem>>, vector<128x128xbf16>,
    return
  }
  func.func @transform_0(%arg0: i32) -> (i32, i32) {
    %c0_i32 = arith.constant 0 : i32
    %c0_i32_0 = arith.constant 0 : i32
    return %arg0, %c0_i32 : i32, i32
  }
  func.func @transform_1(%arg0: i32) -> (i32, i32) {
    %c0_i32 = arith.constant 0 : i32
    %c0_i32_0 = arith.constant 0 : i32
    %c0_i32_1 = arith.constant 0 : i32
    return %c0_i32, %c0_i32_0 : i32, i32
  }
  func.func @transform_2(%arg0: i32) -> (i32, i32) {
    %c0_i32 = arith.constant 0 : i32
    %c0_i32_0 = arith.constant 0 : i32
    return %arg0, %c0_i32 : i32, i32
  }
}

module attributes {stable_mosaic.version = 11 : i64} {
  func.func @_propagate_fuse_w2_kernel(%arg0: i32, %arg1: i32, %arg2: memref<128x128xbf16, #tpu.memory_space<vmem>>, %arg3: memref<128x128xbf16, #tpu.memory_space<vmem>>, %arg4: memref<1x128xf32, #tpu.memory_space<vmem>>, %arg5: memref<128x128xbf16, #tpu.memory_space<vmem>>, %arg6: memref<128x128xbf16, #tpu.memory_space<vmem>>, %arg7: memref<128x128xf32, #tpu.memory_space<vmem>>) attributes {dimension_semantics = [#tpu.dimension_semantics<parallel>, #tpu.dimension_semantics<arbitrary>], iteration_bounds = array<i64: 1, 1>, scalar_prefetch = 0 : i64, scratch_operands = 1 : i64, tpu.core_type = #tpu.core_type<tc>, window_params = [{transform_indices = @transform_0, window_bounds = array<i64: 128, 128>}, {pipeline_mode = #tpu.pipeline_mode<synchronous>, transform_indices = @transform_1, window_bounds = array<i64: 128, 128>}, {pipeline_mode = #tpu.pipeline_mode<synchronous>, transform_indices = @transform_2, window_bounds = array<i64: 1, 128>}, {pipeline_mode = #tpu.pipeline_mode<synchronous>, transform_indices = @transform_3, window_bounds = array<i64: 128, 128>}, {transform_indices = @transform_4, window_bounds = array<i64: 128, 128>}]} {
    %c0_i32 = arith.constant 0 : i32
    %0 = arith.cmpi eq, %arg1, %c0_i32 : i32
    %1 = arith.extui %0 : i1 to i32
    %c0_i32_0 = arith.constant 0 : i32
    %2 = arith.cmpi ne, %1, %c0_i32_0 : i32
    scf.if %2 {
      %cst_9 = arith.constant 0.000000e+00 : f32
      %15 = vector.broadcast %cst_9 : f32 to vector<128x128xf32>
      %c0_10 = arith.constant 0 : index
      %c0_11 = arith.constant 0 : index
      %16 = vector.load %arg7[%c0_10, %c0_11] : memref<128x128xf32, #tpu.memory_space<vmem>>, vector<128x128xf32>
      tpu.vector_store %arg7[%c0_10, %c0_11], %15 {strides = array<i32>} : memref<128x128xf32, #tpu.memory_space<vmem>>, vector<128x128xf32>,
    } else {
    }
    %c128_i32 = arith.constant 128 : i32
    %3 = arith.muli %arg1, %c128_i32 : i32
    %4 = tpu.assume_multiple %3, 128 : i32
    %c0 = arith.constant 0 : index
    %c0_1 = arith.constant 0 : index
    %5 = vector.load %arg7[%c0, %c0_1] : memref<128x128xf32, #tpu.memory_space<vmem>>, vector<128x128xf32>
    %c0_2 = arith.constant 0 : index
    %c0_3 = arith.constant 0 : index
    %6 = vector.load %arg2[%c0_2, %c0_3] : memref<128x128xbf16, #tpu.memory_space<vmem>>, vector<128x128xbf16>
    %7 = arith.index_cast %4 : i32 to index
    %c0_4 = arith.constant 0 : index
    %8 = vector.load %arg3[%7, %c0_4] : memref<128x128xbf16, #tpu.memory_space<vmem>>, vector<128x128xbf16>
    %cst = arith.constant dense<0.000000e+00> : vector<128x128xf32>
    %9 = tpu.matmul %6, %8, %cst {dimension_numbers = #tpu.dot_dimension_numbers<[1], [0], [0], [1], [0, 0, 1, 1], [], []>} : vector<128x128xbf16>, vector<128x128xbf16>, vector<128x128xf32> -> vector<128x128xf32>
    %10 = arith.addf %5, %9 : vector<128x128xf32>
    %c0_5 = arith.constant 0 : index
    %c0_6 = arith.constant 0 : index
    %11 = vector.load %arg7[%c0_5, %c0_6] : memref<128x128xf32, #tpu.memory_space<vmem>>, vector<128x128xf32>
    tpu.vector_store %arg7[%c0_5, %c0_6], %10 {strides = array<i32>} : memref<128x128xf32, #tpu.memory_space<vmem>>, vector<128x128xf32>,
    %c0_i32_7 = arith.constant 0 : i32
    %12 = arith.cmpi eq, %arg1, %c0_i32_7 : i32
    %13 = arith.extui %12 : i1 to i32
    %c0_i32_8 = arith.constant 0 : i32
    %14 = arith.cmpi ne, %13, %c0_i32_8 : i32
    scf.if %14 {
      %c0_9 = arith.constant 0 : index
      %c0_10 = arith.constant 0 : index
      %15 = vector.load %arg7[%c0_9, %c0_10] : memref<128x128xf32, #tpu.memory_space<vmem>>, vector<128x128xf32>
      %c0_11 = arith.constant 0 : index
      %c0_12 = arith.constant 0 : index
      %16 = vector.load %arg4[%c0_11, %c0_12] : memref<1x128xf32, #tpu.memory_space<vmem>>, vector<1x128xf32>
      %17 = vector.broadcast %16 : vector<1x128xf32> to vector<128x128xf32>
      %18 = arith.addf %15, %17 : vector<128x128xf32>
      %cst_13 = arith.constant 0.000000e+00 : f32
      %19 = vector.broadcast %cst_13 : f32 to vector<128x128xf32>
      %20 = arith.maximumf %18, %19 : vector<128x128xf32>
      %21 = arith.truncf %20 : vector<128x128xf32> to vector<128x128xbf16>
      %c0_14 = arith.constant 0 : index
      %c0_15 = arith.constant 0 : index
      %22 = vector.load %arg5[%c0_14, %c0_15] : memref<128x128xbf16, #tpu.memory_space<vmem>>, vector<128x128xbf16>
      %cst_16 = arith.constant dense<0.000000e+00> : vector<128x128xf32>
      %23 = tpu.matmul %21, %22, %cst_16 {dimension_numbers = #tpu.dot_dimension_numbers<[1], [0], [0], [1], [0, 0, 1, 1], [], []>} : vector<128x128xbf16>, vector<128x128xbf16>, vector<128x128xf32> -> vector<128x128xf32>
      %24 = arith.truncf %23 : vector<128x128xf32> to vector<128x128xbf16>
      %c0_17 = arith.constant 0 : index
      %c0_18 = arith.constant 0 : index
      %25 = vector.load %arg6[%c0_17, %c0_18] : memref<128x128xbf16, #tpu.memory_space<vmem>>, vector<128x128xbf16>
      tpu.vector_store %arg6[%c0_17, %c0_18], %24 {strides = array<i32>} : memref<128x128xbf16, #tpu.memory_space<vmem>>, vector<128x128xbf16>,
    } else {
    }
    return
  }
  func.func @transform_0(%arg0: i32, %arg1: i32) -> (i32, i32) {
    %c0_i32 = arith.constant 0 : i32
    return %arg0, %arg1 : i32, i32
  }
  func.func @transform_1(%arg0: i32, %arg1: i32) -> (i32, i32) {
    %c0_i32 = arith.constant 0 : i32
    %c0_i32_0 = arith.constant 0 : i32
    %c0_i32_1 = arith.constant 0 : i32
    return %c0_i32, %c0_i32_0 : i32, i32
  }
  func.func @transform_2(%arg0: i32, %arg1: i32) -> (i32, i32) {
    %c0_i32 = arith.constant 0 : i32
    %c0_i32_0 = arith.constant 0 : i32
    %c0_i32_1 = arith.constant 0 : i32
    return %c0_i32, %c0_i32_0 : i32, i32
  }
  func.func @transform_3(%arg0: i32, %arg1: i32) -> (i32, i32) {
    %c0_i32 = arith.constant 0 : i32
    %c0_i32_0 = arith.constant 0 : i32
    %c0_i32_1 = arith.constant 0 : i32
    return %c0_i32, %c0_i32_0 : i32, i32
  }
  func.func @transform_4(%arg0: i32, %arg1: i32) -> (i32, i32) {
    %c0_i32 = arith.constant 0 : i32
    %c0_i32_0 = arith.constant 0 : i32
    return %arg0, %c0_i32 : i32, i32
  }
}

module attributes {stable_mosaic.version = 11 : i64} {
  func.func @_propagate_pool_fc_kernel(%arg0: i32, %arg1: i32, %arg2: memref<128x128xbf16, #tpu.memory_space<vmem>>, %arg3: memref<128x128xbf16, #tpu.memory_space<vmem>>, %arg4: memref<1x128xf32, #tpu.memory_space<vmem>>, %arg5: memref<8x128xf32, #tpu.memory_space<vmem>>, %arg6: memref<128x128xf32, #tpu.memory_space<vmem>>, %arg7: memref<1x128xf32, #tpu.memory_space<vmem>>, %arg8: memref<8x128xf32, #tpu.memory_space<vmem>>, %arg9: memref<128x128xf32, #tpu.memory_space<vmem>>, %arg10: memref<8x128xf32, #tpu.memory_space<vmem>>) attributes {dimension_semantics = [#tpu.dimension_semantics<arbitrary>, #tpu.dimension_semantics<arbitrary>], iteration_bounds = array<i64: 1, 1>, scalar_prefetch = 0 : i64, scratch_operands = 2 : i64, tpu.core_type = #tpu.core_type<tc>, window_params = [{transform_indices = @transform_0, window_bounds = array<i64: 128, 128>}, {pipeline_mode = #tpu.pipeline_mode<synchronous>, transform_indices = @transform_1, window_bounds = array<i64: 128, 128>}, {pipeline_mode = #tpu.pipeline_mode<synchronous>, transform_indices = @transform_2, window_bounds = array<i64: 1, 128>}, {transform_indices = @transform_3, window_bounds = array<i64: 8, 128>}, {pipeline_mode = #tpu.pipeline_mode<synchronous>, transform_indices = @transform_4, window_bounds = array<i64: 128, 128>}, {pipeline_mode = #tpu.pipeline_mode<synchronous>, transform_indices = @transform_5, window_bounds = array<i64: 1, 128>}, {pipeline_mode = #tpu.pipeline_mode<synchronous>, transform_indices = @transform_6, window_bounds = array<i64: 8, 128>}]} {
    %c0_i32 = arith.constant 0 : i32
    %0 = arith.cmpi eq, %arg0, %c0_i32 : i32
    %c0_i32_0 = arith.constant 0 : i32
    %1 = arith.cmpi eq, %arg1, %c0_i32_0 : i32
    %2 = arith.andi %0, %1 : i1
    %3 = arith.extui %2 : i1 to i32
    %c0_i32_1 = arith.constant 0 : i32
    %4 = arith.cmpi ne, %3, %c0_i32_1 : i32
    scf.if %4 {
      %cst_15 = arith.constant 0.000000e+00 : f32
      %25 = vector.broadcast %cst_15 : f32 to vector<8x128xf32>
      %c0_16 = arith.constant 0 : index
      %c0_17 = arith.constant 0 : index
      %26 = vector.load %arg10[%c0_16, %c0_17] : memref<8x128xf32, #tpu.memory_space<vmem>>, vector<8x128xf32>
      tpu.vector_store %arg10[%c0_16, %c0_17], %25 {strides = array<i32>} : memref<8x128xf32, #tpu.memory_space<vmem>>, vector<8x128xf32>,
    } else {
    }
    %c0_i32_2 = arith.constant 0 : i32
    %5 = arith.cmpi eq, %arg1, %c0_i32_2 : i32
    %6 = arith.extui %5 : i1 to i32
    %c0_i32_3 = arith.constant 0 : i32
    %7 = arith.cmpi ne, %6, %c0_i32_3 : i32
    scf.if %7 {
      %cst_15 = arith.constant 0.000000e+00 : f32
      %25 = vector.broadcast %cst_15 : f32 to vector<128x128xf32>
      %c0_16 = arith.constant 0 : index
      %c0_17 = arith.constant 0 : index
      %26 = vector.load %arg9[%c0_16, %c0_17] : memref<128x128xf32, #tpu.memory_space<vmem>>, vector<128x128xf32>
      tpu.vector_store %arg9[%c0_16, %c0_17], %25 {strides = array<i32>} : memref<128x128xf32, #tpu.memory_space<vmem>>, vector<128x128xf32>,
    } else {
    }
    %c128_i32 = arith.constant 128 : i32
    %8 = arith.muli %arg1, %c128_i32 : i32
    %9 = tpu.assume_multiple %8, 128 : i32
    %c0 = arith.constant 0 : index
    %c0_4 = arith.constant 0 : index
    %10 = vector.load %arg9[%c0, %c0_4] : memref<128x128xf32, #tpu.memory_space<vmem>>, vector<128x128xf32>
    %c0_5 = arith.constant 0 : index
    %c0_6 = arith.constant 0 : index
    %11 = vector.load %arg2[%c0_5, %c0_6] : memref<128x128xbf16, #tpu.memory_space<vmem>>, vector<128x128xbf16>
    %12 = arith.index_cast %9 : i32 to index
    %c0_7 = arith.constant 0 : index
    %13 = vector.load %arg3[%12, %c0_7] : memref<128x128xbf16, #tpu.memory_space<vmem>>, vector<128x128xbf16>
    %cst = arith.constant dense<0.000000e+00> : vector<128x128xf32>
    %14 = tpu.matmul %11, %13, %cst {dimension_numbers = #tpu.dot_dimension_numbers<[1], [0], [0], [1], [0, 0, 1, 1], [], []>} : vector<128x128xbf16>, vector<128x128xbf16>, vector<128x128xf32> -> vector<128x128xf32>
    %15 = arith.addf %10, %14 : vector<128x128xf32>
    %c0_8 = arith.constant 0 : index
    %c0_9 = arith.constant 0 : index
    %16 = vector.load %arg9[%c0_8, %c0_9] : memref<128x128xf32, #tpu.memory_space<vmem>>, vector<128x128xf32>
    tpu.vector_store %arg9[%c0_8, %c0_9], %15 {strides = array<i32>} : memref<128x128xf32, #tpu.memory_space<vmem>>, vector<128x128xf32>,
    %c0_i32_10 = arith.constant 0 : i32
    %17 = arith.cmpi eq, %arg1, %c0_i32_10 : i32
    %18 = arith.extui %17 : i1 to i32
    %c0_i32_11 = arith.constant 0 : i32
    %19 = arith.cmpi ne, %18, %c0_i32_11 : i32
    scf.if %19 {
      %c0_15 = arith.constant 0 : index
      %c0_16 = arith.constant 0 : index
      %25 = vector.load %arg9[%c0_15, %c0_16] : memref<128x128xf32, #tpu.memory_space<vmem>>, vector<128x128xf32>
      %c0_17 = arith.constant 0 : index
      %c0_18 = arith.constant 0 : index
      %26 = vector.load %arg4[%c0_17, %c0_18] : memref<1x128xf32, #tpu.memory_space<vmem>>, vector<1x128xf32>
      %27 = vector.broadcast %26 : vector<1x128xf32> to vector<128x128xf32>
      %28 = arith.addf %25, %27 : vector<128x128xf32>
      %cst_19 = arith.constant 0.000000e+00 : f32
      %29 = vector.broadcast %cst_19 : f32 to vector<128x128xf32>
      %30 = arith.maximumf %28, %29 : vector<128x128xf32>
      %c0_20 = arith.constant 0 : index
      %c0_21 = arith.constant 0 : index
      %31 = vector.load %arg10[%c0_20, %c0_21] : memref<8x128xf32, #tpu.memory_space<vmem>>, vector<8x128xf32>
      %c0_22 = arith.constant 0 : index
      %c0_23 = arith.constant 0 : index
      %32 = vector.load %arg5[%c0_22, %c0_23] : memref<8x128xf32, #tpu.memory_space<vmem>>, vector<8x128xf32>
      %cst_24 = arith.constant dense<0.000000e+00> : vector<8x128xf32>
      %33 = tpu.matmul %32, %30, %cst_24 {dimension_numbers = #tpu.dot_dimension_numbers<[1], [0], [0], [1], [0, 0, 1, 1], [], []>} : vector<8x128xf32>, vector<128x128xf32>, vector<8x128xf32> -> vector<8x128xf32>
      %34 = arith.addf %31, %33 : vector<8x128xf32>
      %c0_25 = arith.constant 0 : index
      %c0_26 = arith.constant 0 : index
      %35 = vector.load %arg10[%c0_25, %c0_26] : memref<8x128xf32, #tpu.memory_space<vmem>>, vector<8x128xf32>
      tpu.vector_store %arg10[%c0_25, %c0_26], %34 {strides = array<i32>} : memref<8x128xf32, #tpu.memory_space<vmem>>, vector<8x128xf32>,
    } else {
    }
    %c0_i32_12 = arith.constant 0 : i32
    %20 = arith.cmpi eq, %arg0, %c0_i32_12 : i32
    %c0_i32_13 = arith.constant 0 : i32
    %21 = arith.cmpi eq, %arg1, %c0_i32_13 : i32
    %22 = arith.andi %20, %21 : i1
    %23 = arith.extui %22 : i1 to i32
    %c0_i32_14 = arith.constant 0 : i32
    %24 = arith.cmpi ne, %23, %c0_i32_14 : i32
    scf.if %24 {
      %c0_15 = arith.constant 0 : index
      %c0_16 = arith.constant 0 : index
      %25 = vector.load %arg10[%c0_15, %c0_16] : memref<8x128xf32, #tpu.memory_space<vmem>>, vector<8x128xf32>
      %c0_17 = arith.constant 0 : index
      %c0_18 = arith.constant 0 : index
      %26 = vector.load %arg6[%c0_17, %c0_18] : memref<128x128xf32, #tpu.memory_space<vmem>>, vector<128x128xf32>
      %cst_19 = arith.constant dense<0.000000e+00> : vector<8x128xf32>
      %27 = tpu.matmul %25, %26, %cst_19 {dimension_numbers = #tpu.dot_dimension_numbers<[1], [0], [0], [1], [0, 0, 1, 1], [], []>} : vector<8x128xf32>, vector<128x128xf32>, vector<8x128xf32> -> vector<8x128xf32>
      %c0_20 = arith.constant 0 : index
      %c0_21 = arith.constant 0 : index
      %28 = vector.load %arg7[%c0_20, %c0_21] : memref<1x128xf32, #tpu.memory_space<vmem>>, vector<1x128xf32>
      %29 = vector.broadcast %28 : vector<1x128xf32> to vector<8x128xf32>
      %30 = arith.addf %27, %29 : vector<8x128xf32>
      %c0_22 = arith.constant 0 : index
      %c0_23 = arith.constant 0 : index
      %31 = vector.load %arg8[%c0_22, %c0_23] : memref<8x128xf32, #tpu.memory_space<vmem>>, vector<8x128xf32>
      tpu.vector_store %arg8[%c0_22, %c0_23], %30 {strides = array<i32>} : memref<8x128xf32, #tpu.memory_space<vmem>>, vector<8x128xf32>,
    } else {
    }
    return
  }
  func.func @transform_0(%arg0: i32, %arg1: i32) -> (i32, i32) {
    %c0_i32 = arith.constant 0 : i32
    return %arg0, %arg1 : i32, i32
  }
  func.func @transform_1(%arg0: i32, %arg1: i32) -> (i32, i32) {
    %c0_i32 = arith.constant 0 : i32
    %c0_i32_0 = arith.constant 0 : i32
    %c0_i32_1 = arith.constant 0 : i32
    return %c0_i32, %c0_i32_0 : i32, i32
  }
  func.func @transform_2(%arg0: i32, %arg1: i32) -> (i32, i32) {
    %c0_i32 = arith.constant 0 : i32
    %c0_i32_0 = arith.constant 0 : i32
    %c0_i32_1 = arith.constant 0 : i32
    return %c0_i32, %c0_i32_0 : i32, i32
  }
  func.func @transform_3(%arg0: i32, %arg1: i32) -> (i32, i32) {
    %c0_i32 = arith.constant 0 : i32
    %c0_i32_0 = arith.constant 0 : i32
    return %c0_i32, %arg0 : i32, i32
  }
  func.func @transform_4(%arg0: i32, %arg1: i32) -> (i32, i32) {
    %c0_i32 = arith.constant 0 : i32
    %c0_i32_0 = arith.constant 0 : i32
    %c0_i32_1 = arith.constant 0 : i32
    return %c0_i32, %c0_i32_0 : i32, i32
  }
  func.func @transform_5(%arg0: i32, %arg1: i32) -> (i32, i32) {
    %c0_i32 = arith.constant 0 : i32
    %c0_i32_0 = arith.constant 0 : i32
    %c0_i32_1 = arith.constant 0 : i32
    return %c0_i32, %c0_i32_0 : i32, i32
  }
  func.func @transform_6(%arg0: i32, %arg1: i32) -> (i32, i32) {
    %c0_i32 = arith.constant 0 : i32
    %c0_i32_0 = arith.constant 0 : i32
    %c0_i32_1 = arith.constant 0 : i32
    return %c0_i32, %c0_i32_0 : i32, i32
  }
}

</mosaic_0001>

<bundles_post_ra>
// kernel: forward.3
= control target key start
LH: loop header
LB: loop body
LE: loop exit
PB: predicated region body
PF: predicated region fallthrough
CT: control target
= control target key end

     0   :  { %s583_s1 = inlined_call_operand.vmem [shape: bf16[128,128], index: 1, kind: input, shape index: {}]   ;;  %s584_s0 = inlined_call_operand.vmem [shape: bf16[128,128], index: 0, kind: input, shape index: {}]   ;;  %s585_s2 = inlined_call_operand.vmem [shape: bf16[128,128], index: 2, kind: output, shape index: {}]  }
   0x1   :  { %v480_v0 = vld [vmem:[%s583_s1] sm:$0xff]   ;;  %v481_v1 = vld [vmem:[%s583_s1 + $0x8] sm:$0xff]   ;;  %v482_v2 = vld [vmem:[%s583_s1 + $0x10] sm:$0xff]  }
   0x2   :  { %432 = vmatprep.subr.bf16.mxu0 %v480_v0  ;;  %464 = vmatprep.subr.bf16.mxu1 %v480_v0  ;;  %v483_v3 = vld [vmem:[%s583_s1 + $0x18] sm:$0xff]   ;;  %v488_v4 = vld [vmem:[%s584_s0] sm:$0xff]   ;;  %v485_v7 = vld [vmem:[%s583_s1 + $0x28] sm:$0xff]  }
   0x3   :  { %433 = vmatpush3.bf16.msra.mxu0 %v480_v0  ;;  %472 = vmatpush3.bf16.msra.mxu1 %v480_v0  ;;  %v489_v5 = vld [vmem:[%s584_s0 + $0x20] sm:$0xff]   ;;  %v486_v8 = vld [vmem:[%s583_s1 + $0x30] sm:$0xff]   ;;  %v487_v9 = vld [vmem:[%s583_s1 + $0x38] sm:$0xff]  }
   0x4   :  { %434 = vmatprep.subr.bf16.mxu0 %v481_v1  ;;  %465 = vmatprep.subr.bf16.mxu1 %v481_v1  ;;  %v484_v6 = vld [vmem:[%s583_s1 + $0x20] sm:$0xff]   ;;  %v490_v10 = vld [vmem:[%s584_s0 + $0x8] sm:$0xff]   ;;  %v492_v12 = vld [vmem:[%s584_s0 + $0x10] sm:$0xff]  }
   0x5   :  { %448 = vmatprep.mubr.bf16.mxu0 %v488_v4  ;;  %456 = vmatprep.mubr.bf16.mxu1 %v489_v5  ;;  %v491_v11 = vld [vmem:[%s584_s0 + $0x28] sm:$0xff]   ;;  %v493_v13 = vld [vmem:[%s584_s0 + $0x30] sm:$0xff]   ;;  %v494_v14 = vld [vmem:[%s584_s0 + $0x18] sm:$0xff]  }
   0x6   :  { %v495_v15 = vld [vmem:[%s584_s0 + $0x38] sm:$0xff]  }
   0x7   :  { %435 = vmatpush3.bf16.msra.mxu0 %v481_v1  ;;  %473 = vmatpush3.bf16.msra.mxu1 %v481_v1 }
   0x8   :  { %436 = vmatprep.subr.bf16.mxu0 %v482_v2  ;;  %466 = vmatprep.subr.bf16.mxu1 %v482_v2 }
   0xb   :  { %437 = vmatpush3.bf16.msra.mxu0 %v482_v2  ;;  %474 = vmatpush3.bf16.msra.mxu1 %v482_v2 }
   0xc   :  { %438 = vmatprep.subr.bf16.mxu0 %v483_v3  ;;  %467 = vmatprep.subr.bf16.mxu1 %v483_v3 }
   0xf   :  { %439 = vmatpush3.bf16.msra.mxu0 %v483_v3  ;;  %475 = vmatpush3.bf16.msra.mxu1 %v483_v3 }
  0x10   :  { %440 = vmatprep.subr.bf16.mxu0 %v484_v6  ;;  %468 = vmatprep.subr.bf16.mxu1 %v484_v6 }
  0x13   :  { %441 = vmatpush3.bf16.msra.mxu0 %v484_v6  ;;  %476 = vmatpush3.bf16.msra.mxu1 %v484_v6 }
  0x14   :  { %442 = vmatprep.subr.bf16.mxu0 %v485_v7  ;;  %469 = vmatprep.subr.bf16.mxu1 %v485_v7 }
  0x17   :  { %443 = vmatpush3.bf16.msra.mxu0 %v485_v7  ;;  %477 = vmatpush3.bf16.msra.mxu1 %v485_v7 }
  0x18   :  { %444 = vmatprep.subr.bf16.mxu0 %v486_v8  ;;  %470 = vmatprep.subr.bf16.mxu1 %v486_v8 }
  0x1b   :  { %445 = vmatpush3.bf16.msra.mxu0 %v486_v8  ;;  %478 = vmatpush3.bf16.msra.mxu1 %v486_v8 }
  0x1c   :  { %446 = vmatprep.subr.bf16.mxu0 %v487_v9  ;;  %471 = vmatprep.subr.bf16.mxu1 %v487_v9 }
  0x1f   :  { %447 = vmatpush3.bf16.msra.mxu0 %v487_v9  ;;  %479 = vmatpush3.bf16.msra.mxu1 %v487_v9 }
  0x22   :  { %449 = vmatmul.mubr.bf16.vlgmr.msra.gmra.mrb[0].mxu0 %v490_v10  ;;  %457 = vmatmul.mubr.bf16.vlgmr.msra.gmra.mrb[0].mxu1 %v491_v11 }
  0x23   :  { %452 = vmatprep.mubr.bf16.mxu0 %v492_v12  ;;  %460 = vmatprep.mubr.bf16.mxu1 %v493_v13 }
  0x2a   :  { %453 = vmatmul.mubr.bf16.gmra.mrb[4].mxu0 %v494_v14  ;;  %461 = vmatmul.mubr.bf16.gmra.mrb[4].mxu1 %v495_v15 }
  0xf5   :  { %v450_v16 = vpop.f32.mrb[0].mxu0  ;;  %v458_v17 = vpop.f32.mrb[0].mxu1 }
  0xf6   :  { %v174_v18 = vpop.f32.mrb[1].mxu0  ;;  %v206_v19 = vpop.f32.mrb[1].mxu1 }
  0xf7   :  { %v451_v20 = vpop.f32.mrb[2].mxu0  ;;  %v459_v21 = vpop.f32.mrb[2].mxu1 }
  0xf8   :  { %v377_v22 = vpack.c.bf16 %v451_v20, %v450_v16  ;;  %v397_v23 = vpack.c.bf16 %v459_v21, %v458_v17  ;;  %v177_v24 = vpop.f32.mrb[3].mxu0  ;;  %v209_v25 = vpop.f32.mrb[3].mxu1 }
  0xf9   :  { %v372_v26 = vpack.c.bf16 %v177_v24, %v174_v18  ;;  %v392_v27 = vpack.c.bf16 %v209_v25, %v206_v19 }
  0xfa   :  { %409 = vst [vmem:[%s585_s2 + $0x8] sm:$0xff] %v377_v22   ;;  %413 = vst [vmem:[%s585_s2 + $0x28] sm:$0xff] %v397_v23  }
  0xfb   :  { %373 = vst [vmem:[%s585_s2] sm:$0xff] %v372_v26   ;;  %412 = vst [vmem:[%s585_s2 + $0x20] sm:$0xff] %v392_v27  }
  0xfd   :  { %v454_v28 = vpop.f32.mrb[4].mxu0  ;;  %v462_v29 = vpop.f32.mrb[4].mxu1 }
  0xfe   :  { %v190_v30 = vpop.f32.mrb[5].mxu0  ;;  %v222_v31 = vpop.f32.mrb[5].mxu1 }
  0xff   :  { %v455_v32 = vpop.f32.mrb[6].mxu0  ;;  %v463_v33 = vpop.f32.mrb[6].mxu1 }
 0x100   :  { %v387_v34 = vpack.c.bf16 %v455_v32, %v454_v28  ;;  %v407_v35 = vpack.c.bf16 %v463_v33, %v462_v29  ;;  %v193_v36 = vpop.f32.mrb[7].mxu0  ;;  %v225_v37 = vpop.f32.mrb[7].mxu1 }
 0x101   :  { %v382_v38 = vpack.c.bf16 %v193_v36, %v190_v30  ;;  %v402_v39 = vpack.c.bf16 %v225_v37, %v222_v31 }
 0x102   :  { %411 = vst [vmem:[%s585_s2 + $0x18] sm:$0xff] %v387_v34   ;;  %415 = vst [vmem:[%s585_s2 + $0x38] sm:$0xff] %v407_v35  }
 0x103   :  { %410 = vst [vmem:[%s585_s2 + $0x10] sm:$0xff] %v382_v38   ;;  %414 = vst [vmem:[%s585_s2 + $0x30] sm:$0xff] %v402_v39  }

// kernel: forward.5
= control target key start
LH: loop header
LB: loop body
LE: loop exit
PB: predicated region body
PF: predicated region fallthrough
CT: control target
= control target key end

     0   :  { %v800_v16 = vmov 0.0|0.0   ;;  %vm801_vm0 = vmmov 0   ;;  %v802_v17 = vmov 0.0   ;;  %s962_s1 = inlined_call_operand.vmem [shape: bf16[128,128], index: 1, kind: input, shape index: {}]   ;;  %s963_s0 = inlined_call_operand.vmem [shape: bf16[128,128], index: 0, kind: input, shape index: {}]   ;;  %s964_s4 = inlined_call_operand.vmem [shape: f32[128,128], index: 4, kind: input, shape index: {}]   ;;  %s965_s2 = inlined_call_operand.vmem [shape: f32[1,128], index: 2, kind: input, shape index: {}]   ;;  %s966_s3 = inlined_call_operand.vmem [shape: f32[8,128], index: 3, kind: input, shape index: {}]   ;;  %s967_s5 = inlined_call_operand.vmem [shape: f32[1,128], index: 5, kind: input, shape index: {}]   ;;  %s968_s6 = inlined_call_operand.vmem [shape: f32[8,128], index: 6, kind: output, shape index: {}]  }
   0x1   :  { %v784_v0 = vld [vmem:[%s962_s1] sm:$0xff]   ;;  %v785_v1 = vld [vmem:[%s962_s1 + $0x8] sm:$0xff]   ;;  %v786_v2 = vld [vmem:[%s962_s1 + $0x10] sm:$0xff]   ;;  %733 = vmatprep.subr.bf16.mxu1 %v800_v16  ;;  %695 = vmatprep.mubr.msk.f32.mxu1 %vm801_vm0, %v802_v17 }
   0x2   :  { %631 = vmatprep.subr.bf16.mxu0 %v784_v0  ;;  %v787_v3 = vld [vmem:[%s962_s1 + $0x18] sm:$0xff]   ;;  %v792_v4 = vld [vmem:[%s963_s0] sm:$0xff]   ;;  %v789_v6 = vld [vmem:[%s962_s1 + $0x28] sm:$0xff]  }
   0x3   :  { %632 = vmatpush3.bf16.msra.mxu0 %v784_v0  ;;  %647 = vmatprep.mubr.bf16.mxu0 %v792_v4  ;;  %v788_v5 = vld [vmem:[%s962_s1 + $0x20] sm:$0xff]   ;;  %v790_v7 = vld [vmem:[%s962_s1 + $0x30] sm:$0xff]   ;;  %v791_v8 = vld [vmem:[%s962_s1 + $0x38] sm:$0xff]  }
   0x4   :  { %633 = vmatprep.subr.bf16.mxu0 %v785_v1  ;;  %v793_v9 = vld [vmem:[%s963_s0 + $0x8] sm:$0xff]   ;;  %v794_v10 = vld [vmem:[%s963_s0 + $0x10] sm:$0xff]   ;;  %v795_v11 = vld [vmem:[%s963_s0 + $0x18] sm:$0xff]  }
   0x5   :  { %v796_v12 = vld [vmem:[%s963_s0 + $0x20] sm:$0xff]   ;;  %v797_v13 = vld [vmem:[%s963_s0 + $0x28] sm:$0xff]   ;;  %v798_v14 = vld [vmem:[%s963_s0 + $0x30] sm:$0xff]  }
   0x6   :  { %v799_v15 = vld [vmem:[%s963_s0 + $0x38] sm:$0xff]   ;;  %v463_v18 = vld [vmem:[%s964_s4] sm:$0xff]  ;;  %v464_v19 = vld [vmem:[%s964_s4 + $0x8] sm:$0xff] }
   0x7   :  { %634 = vmatpush3.bf16.msra.mxu0 %v785_v1  ;;  %v465_v20 = vld [vmem:[%s964_s4 + $0x10] sm:$0xff]  ;;  %v758_v21 = vpack.c.bf16 %v464_v19, %v463_v18  ;;  %v466_v22 = vld [vmem:[%s964_s4 + $0x18] sm:$0xff]  ;;  %v467_v24 = vld [vmem:[%s964_s4 + $0x20] sm:$0xff] }
   0x8   :  { %635 = vmatprep.subr.bf16.mxu0 %v786_v2  ;;  %v761_v23 = vpack.c.bf16 %v466_v22, %v465_v20  ;;  %v468_v25 = vld [vmem:[%s964_s4 + $0x28] sm:$0xff]  ;;  %v469_v27 = vld [vmem:[%s964_s4 + $0x30] sm:$0xff]  ;;  %v470_v28 = vld [vmem:[%s964_s4 + $0x38] sm:$0xff] }
   0x9   :  { %v764_v26 = vpack.c.bf16 %v468_v25, %v467_v24  ;;  %v767_v29 = vpack.c.bf16 %v470_v28, %v469_v27  ;;  %v471_v30 = vld [vmem:[%s964_s4 + $0x40] sm:$0xff]  ;;  %v472_v31 = vld [vmem:[%s964_s4 + $0x48] sm:$0xff]  ;;  %v473_v33 = vld [vmem:[%s964_s4 + $0x50] sm:$0xff] }
   0xa   :  { %v770_v32 = vpack.c.bf16 %v472_v31, %v471_v30  ;;  %v474_v34 = vld [vmem:[%s964_s4 + $0x58] sm:$0xff]  ;;  %v475_v36 = vld [vmem:[%s964_s4 + $0x60] sm:$0xff]  ;;  %v476_v37 = vld [vmem:[%s964_s4 + $0x68] sm:$0xff] }
   0xb   :  { %636 = vmatpush3.bf16.msra.mxu0 %v786_v2  ;;  %v773_v35 = vpack.c.bf16 %v474_v34, %v473_v33  ;;  %v776_v38 = vpack.c.bf16 %v476_v37, %v475_v36  ;;  %v477_v39 = vld [vmem:[%s964_s4 + $0x70] sm:$0xff]  ;;  %v478_v40 = vld [vmem:[%s964_s4 + $0x78] sm:$0xff]  ;;  %v579_v42 = vld [vmem:[%s965_s2] ss:$0 sm:$0xff] }
   0xc   :  { %637 = vmatprep.subr.bf16.mxu0 %v787_v3  ;;  %v779_v41 = vpack.c.bf16 %v478_v40, %v477_v39  ;;  %v387_v36 = vld [vmem:[%s966_s3] sm:$0xff] }
   0xd   :  { %v580_v39 = vld [vmem:[%s967_s5] ss:$0 sm:$0xff] }
   0xf   :  { %638 = vmatpush3.bf16.msra.mxu0 %v787_v3 }
  0x10   :  { %639 = vmatprep.subr.bf16.mxu0 %v788_v5 }
  0x13   :  { %640 = vmatpush3.bf16.msra.mxu0 %v788_v5 }
  0x14   :  { %641 = vmatprep.subr.bf16.mxu0 %v789_v6 }
  0x17   :  { %642 = vmatpush3.bf16.msra.mxu0 %v789_v6 }
  0x18   :  { %643 = vmatprep.subr.bf16.mxu0 %v790_v7 }
  0x1b   :  { %644 = vmatpush3.bf16.msra.mxu0 %v790_v7 }
  0x1c   :  { %645 = vmatprep.subr.bf16.mxu0 %v791_v8 }
  0x1f   :  { %646 = vmatpush3.bf16.msra.mxu0 %v791_v8 }
  0x20   :  { %757 = vmatprep.subr.bf16.mxu0 %v800_v16 }
  0x22   :  { %648 = vmatmul.mubr.bf16.vlgmr.msra.gmra.mrb[0].mxu0 %v793_v9 }
  0x23   :  { %651 = vmatprep.mubr.bf16.mxu0 %v794_v10  ;;  %759 = vmatpush3.bf16.msra.mxu0 %v758_v21 }
  0x24   :  { %760 = vmatprep.subr.bf16.mxu0 %v800_v16 }
  0x27   :  { %762 = vmatpush3.bf16.msra.mxu0 %v761_v23 }
  0x28   :  { %763 = vmatprep.subr.bf16.mxu0 %v800_v16 }
  0x2a   :  { %652 = vmatmul.mubr.bf16.gmra.mrb[4].mxu0 %v795_v11 }
  0x2b   :  { %655 = vmatprep.mubr.bf16.mxu0 %v796_v12  ;;  %765 = vmatpush3.bf16.msra.mxu0 %v764_v26 }
  0x2c   :  { %766 = vmatprep.subr.bf16.mxu0 %v800_v16 }
  0x2f   :  { %768 = vmatpush3.bf16.msra.mxu0 %v767_v29 }
  0x30   :  { %769 = vmatprep.subr.bf16.mxu0 %v800_v16 }
  0x32   :  { %656 = vmatmul.mubr.bf16.gmra.mrb[8].mxu0 %v797_v13 }
  0x33   :  { %659 = vmatprep.mubr.bf16.mxu0 %v798_v14  ;;  %771 = vmatpush3.bf16.msra.mxu0 %v770_v32 }
  0x34   :  { %772 = vmatprep.subr.bf16.mxu0 %v800_v16 }
  0x37   :  { %774 = vmatpush3.bf16.msra.mxu0 %v773_v35 }
  0x38   :  { %775 = vmatprep.subr.bf16.mxu0 %v800_v16 }
  0x3a   :  { %660 = vmatmul.mubr.bf16.gmra.mrb[12].mxu0 %v799_v15 }
  0x3b   :  { %730 = vmatprep.mubr.msk.f32.mxu0 %vm801_vm0, %v802_v17  ;;  %777 = vmatpush3.bf16.msra.mxu0 %v776_v38 }
  0x3c   :  { %778 = vmatprep.subr.bf16.mxu0 %v800_v16 }
  0x3f   :  { %780 = vmatpush3.bf16.msra.mxu0 %v779_v41 }
  0xf5   :  { %v649_v43 = vpop.f32.mrb[0].mxu0 }
  0xf6   :  { %v356_v44 = vadd.f32 %v649_v43, %v579_v42  ;;  %v233_v45 = vpop.f32.mrb[1].mxu0 }
  0xf7   :  { %v354_v46 = vadd.f32 %v579_v42, %v233_v45  ;;  %v650_v47 = vpop.f32.mrb[2].mxu0 }
  0xf8   :  { %v357_v48 = vadd.f32 %v650_v47, %v579_v42  ;;  %v236_v49 = vpop.f32.mrb[3].mxu0  ;;  %v372_v51 = vmax.f32 %v356_v44, 0.0 }
  0xf9   :  { %v355_v50 = vadd.f32 %v579_v42, %v236_v49  ;;  %v370_v53 = vmax.f32 %v354_v46, 0.0 }
  0xfa   :  { %v373_v52 = vmax.f32 %v357_v48, 0.0 }
  0xfb   :  { %v371_v54 = vmax.f32 %v355_v50, 0.0 }
  0xfc   :  { %v737_v55 = vpack.c.bf16 %v373_v52, %v372_v51 }
  0xfd   :  { %v653_v56 = vpop.f32.mrb[4].mxu0  ;;  %v734_v57 = vpack.c.bf16 %v371_v54, %v370_v53 }
  0xfe   :  { %v360_v58 = vadd.f32 %v653_v56, %v579_v42  ;;  %v249_v59 = vpop.f32.mrb[5].mxu0 }
  0xff   :  { %v358_v60 = vadd.f32 %v579_v42, %v249_v59  ;;  %v654_v61 = vpop.f32.mrb[6].mxu0  ;;  %735 = vmatpush3.bf16.msra.mxu1 %v734_v57 }
 0x100   :  { %v361_v62 = vadd.f32 %v654_v61, %v579_v42  ;;  %v252_v63 = vpop.f32.mrb[7].mxu0  ;;  %736 = vmatprep.subr.bf16.mxu1 %v800_v16  ;;  %v376_v1 = vmax.f32 %v360_v58, 0.0 }
 0x101   :  { %v359_v0 = vadd.f32 %v579_v42, %v252_v63  ;;  %v374_v3 = vmax.f32 %v358_v60, 0.0 }
 0x102   :  { %v377_v2 = vmax.f32 %v361_v62, 0.0 }
 0x103   :  { %v375_v4 = vmax.f32 %v359_v0, 0.0  ;;  %738 = vmatpush3.bf16.msra.mxu1 %v737_v55 }
 0x104   :  { %v743_v5 = vpack.c.bf16 %v377_v2, %v376_v1  ;;  %739 = vmatprep.subr.bf16.mxu1 %v800_v16 }
 0x105   :  { %v740_v6 = vpack.c.bf16 %v375_v4, %v374_v3  ;;  %v657_v7 = vpop.f32.mrb[8].mxu0 }
 0x106   :  { %v364_v8 = vadd.f32 %v657_v7, %v579_v42  ;;  %v265_v9 = vpop.f32.mrb[9].mxu0 }
 0x107   :  { %v362_v10 = vadd.f32 %v579_v42, %v265_v9  ;;  %v658_v11 = vpop.f32.mrb[10].mxu0  ;;  %741 = vmatpush3.bf16.msra.mxu1 %v740_v6 }
 0x108   :  { %v365_v12 = vadd.f32 %v658_v11, %v579_v42  ;;  %v268_v13 = vpop.f32.mrb[11].mxu0  ;;  %742 = vmatprep.subr.bf16.mxu1 %v800_v16  ;;  %v380_v15 = vmax.f32 %v364_v8, 0.0 }
 0x109   :  { %v363_v14 = vadd.f32 %v579_v42, %v268_v13  ;;  %v378_v18 = vmax.f32 %v362_v10, 0.0 }
 0x10a   :  { %v381_v17 = vmax.f32 %v365_v12, 0.0 }
 0x10b   :  { %v379_v19 = vmax.f32 %v363_v14, 0.0  ;;  %744 = vmatpush3.bf16.msra.mxu1 %v743_v5 }
 0x10c   :  { %v749_v20 = vpack.c.bf16 %v381_v17, %v380_v15  ;;  %745 = vmatprep.subr.bf16.mxu1 %v800_v16 }
 0x10d   :  { %v746_v21 = vpack.c.bf16 %v379_v19, %v378_v18  ;;  %v661_v22 = vpop.f32.mrb[12].mxu0 }
 0x10e   :  { %v368_v23 = vadd.f32 %v661_v22, %v579_v42  ;;  %v281_v24 = vpop.f32.mrb[13].mxu0 }
 0x10f   :  { %v366_v25 = vadd.f32 %v579_v42, %v281_v24  ;;  %v662_v26 = vpop.f32.mrb[14].mxu0  ;;  %747 = vmatpush3.bf16.msra.mxu1 %v746_v21 }
 0x110   :  { %v369_v27 = vadd.f32 %v662_v26, %v579_v42  ;;  %v284_v28 = vpop.f32.mrb[15].mxu0  ;;  %748 = vmatprep.subr.bf16.mxu1 %v800_v16  ;;  %v384_v30 = vmax.f32 %v368_v23, 0.0 }
 0x111   :  { %v367_v29 = vadd.f32 %v579_v42, %v284_v28  ;;  %v382_v32 = vmax.f32 %v366_v25, 0.0 }
 0x112   :  { %v385_v31 = vmax.f32 %v369_v27, 0.0 }
 0x113   :  { %v383_v33 = vmax.f32 %v367_v29, 0.0  ;;  %750 = vmatpush3.bf16.msra.mxu1 %v749_v20 }
 0x114   :  { %v755_v34 = vpack.c.bf16 %v385_v31, %v384_v30  ;;  %751 = vmatprep.subr.bf16.mxu1 %v800_v16 }
 0x115   :  { %v752_v35 = vpack.c.bf16 %v383_v33, %v382_v32 }
 0x117   :  { %753 = vmatpush3.bf16.msra.mxu1 %v752_v35 }
 0x118   :  { %754 = vmatprep.subr.bf16.mxu1 %v800_v16 }
 0x11b   :  { %756 = vmatpush3.bf16.msra.mxu1 %v755_v34 }
 0x11e   :  { %696 = vmatmul.mubr.f32.vlgmr.msra.gmra.mrb[0].mxu1 %v387_v36 }
 0x1f1   :  { %v454_v37 = vpop.f32.mrb[0].mxu1 }
 0x1f2   :  { %v697_v38 = vpop.f32.mrb[1].mxu1  ;;  %731 = vmatmul.mubr.f32.vlgmr.msra.gmra.mrb[16].mxu0 %v454_v37 }
 0x2c5   :  { %v552_v40 = vpop.f32.mrb[16].mxu0 }
 0x2c6   :  { %v553_v41 = vadd.f32 %v580_v39, %v552_v40  ;;  %v732_v42 = vpop.f32.mrb[17].mxu0 }
 0x2c8   :  { %556 = vst [vmem:[%s968_s6] sm:$0xff] %v553_v41 }

// kernel: forward.4
= control target key start
LH: loop header
LB: loop body
LE: loop exit
PB: predicated region body
PF: predicated region fallthrough
CT: control target
= control target key end

     0   :  { %s977_s1 = inlined_call_operand.vmem [shape: bf16[128,128], index: 1, kind: input, shape index: {}]   ;;  %s978_s0 = inlined_call_operand.vmem [shape: bf16[128,128], index: 0, kind: input, shape index: {}]   ;;  %s979_s3 = inlined_call_operand.vmem [shape: bf16[128,128], index: 3, kind: input, shape index: {}]   ;;  %s980_s2 = inlined_call_operand.vmem [shape: f32[1,128], index: 2, kind: input, shape index: {}]   ;;  %s981_s4 = inlined_call_operand.vmem [shape: bf16[128,128], index: 4, kind: output, shape index: {}]  }
   0x1   :  { %v829_v0 = vld [vmem:[%s977_s1] sm:$0xff]   ;;  %v830_v1 = vld [vmem:[%s977_s1 + $0x8] sm:$0xff]   ;;  %v831_v2 = vld [vmem:[%s977_s1 + $0x10] sm:$0xff]  }
   0x2   :  { %765 = vmatprep.subr.bf16.mxu0 %v829_v0  ;;  %v832_v3 = vld [vmem:[%s977_s1 + $0x18] sm:$0xff]   ;;  %v837_v4 = vld [vmem:[%s978_s0] sm:$0xff]   ;;  %v834_v6 = vld [vmem:[%s977_s1 + $0x28] sm:$0xff]  }
   0x3   :  { %766 = vmatpush3.bf16.msra.mxu0 %v829_v0  ;;  %781 = vmatprep.mubr.bf16.mxu0 %v837_v4  ;;  %v833_v5 = vld [vmem:[%s977_s1 + $0x20] sm:$0xff]   ;;  %v846_v8 = vld [vmem:[%s979_s3 + $0x8] sm:$0xff]   ;;  %v835_v9 = vld [vmem:[%s977_s1 + $0x30] sm:$0xff]  }
   0x4   :  { %767 = vmatprep.subr.bf16.mxu0 %v830_v1  ;;  %v845_v7 = vld [vmem:[%s979_s3] sm:$0xff]   ;;  %v847_v10 = vld [vmem:[%s979_s3 + $0x10] sm:$0xff]   ;;  %v836_v11 = vld [vmem:[%s977_s1 + $0x38] sm:$0xff]  }
   0x5   :  { %797 = vmatprep.subr.bf16.mxu1 %v845_v7  ;;  %v848_v12 = vld [vmem:[%s979_s3 + $0x18] sm:$0xff]   ;;  %v849_v13 = vld [vmem:[%s979_s3 + $0x20] sm:$0xff]   ;;  %v838_v14 = vld [vmem:[%s978_s0 + $0x8] sm:$0xff]  }
   0x6   :  { %798 = vmatpush3.bf16.msra.mxu1 %v845_v7  ;;  %v839_v15 = vld [vmem:[%s978_s0 + $0x10] sm:$0xff]   ;;  %v850_v16 = vld [vmem:[%s979_s3 + $0x28] sm:$0xff]   ;;  %v840_v17 = vld [vmem:[%s978_s0 + $0x18] sm:$0xff]  }
   0x7   :  { %768 = vmatpush3.bf16.msra.mxu0 %v830_v1  ;;  %799 = vmatprep.subr.bf16.mxu1 %v846_v8  ;;  %v841_v18 = vld [vmem:[%s978_s0 + $0x20] sm:$0xff]   ;;  %v842_v19 = vld [vmem:[%s978_s0 + $0x28] sm:$0xff]   ;;  %v843_v20 = vld [vmem:[%s978_s0 + $0x30] sm:$0xff]  }
   0x8   :  { %769 = vmatprep.subr.bf16.mxu0 %v831_v2  ;;  %v844_v21 = vld [vmem:[%s978_s0 + $0x38] sm:$0xff]   ;;  %v851_v22 = vld [vmem:[%s979_s3 + $0x30] sm:$0xff]   ;;  %v645_v24 = vld [vmem:[%s980_s2] ss:$0 sm:$0xff] }
   0x9   :  { %v852_v23 = vld [vmem:[%s979_s3 + $0x38] sm:$0xff]  }
   0xa   :  { %800 = vmatpush3.bf16.msra.mxu1 %v846_v8 }
   0xb   :  { %770 = vmatpush3.bf16.msra.mxu0 %v831_v2  ;;  %801 = vmatprep.subr.bf16.mxu1 %v847_v10 }
   0xc   :  { %771 = vmatprep.subr.bf16.mxu0 %v832_v3 }
   0xe   :  { %802 = vmatpush3.bf16.msra.mxu1 %v847_v10 }
   0xf   :  { %772 = vmatpush3.bf16.msra.mxu0 %v832_v3  ;;  %803 = vmatprep.subr.bf16.mxu1 %v848_v12 }
  0x10   :  { %773 = vmatprep.subr.bf16.mxu0 %v833_v5 }
  0x12   :  { %804 = vmatpush3.bf16.msra.mxu1 %v848_v12 }
  0x13   :  { %774 = vmatpush3.bf16.msra.mxu0 %v833_v5  ;;  %805 = vmatprep.subr.bf16.mxu1 %v849_v13 }
  0x14   :  { %775 = vmatprep.subr.bf16.mxu0 %v834_v6 }
  0x16   :  { %806 = vmatpush3.bf16.msra.mxu1 %v849_v13 }
  0x17   :  { %776 = vmatpush3.bf16.msra.mxu0 %v834_v6  ;;  %807 = vmatprep.subr.bf16.mxu1 %v850_v16 }
  0x18   :  { %777 = vmatprep.subr.bf16.mxu0 %v835_v9 }
  0x1a   :  { %808 = vmatpush3.bf16.msra.mxu1 %v850_v16 }
  0x1b   :  { %778 = vmatpush3.bf16.msra.mxu0 %v835_v9  ;;  %809 = vmatprep.subr.bf16.mxu1 %v851_v22 }
  0x1c   :  { %779 = vmatprep.subr.bf16.mxu0 %v836_v11 }
  0x1e   :  { %810 = vmatpush3.bf16.msra.mxu1 %v851_v22 }
  0x1f   :  { %780 = vmatpush3.bf16.msra.mxu0 %v836_v11  ;;  %811 = vmatprep.subr.bf16.mxu1 %v852_v23 }
  0x22   :  { %782 = vmatmul.mubr.bf16.vlgmr.msra.gmra.mrb[0].mxu0 %v838_v14  ;;  %812 = vmatpush3.bf16.msra.mxu1 %v852_v23 }
  0x23   :  { %785 = vmatprep.mubr.bf16.mxu0 %v839_v15 }
  0x2a   :  { %786 = vmatmul.mubr.bf16.gmra.mrb[4].mxu0 %v840_v17 }
  0x2b   :  { %789 = vmatprep.mubr.bf16.mxu0 %v841_v18 }
  0x32   :  { %790 = vmatmul.mubr.bf16.gmra.mrb[8].mxu0 %v842_v19 }
  0x33   :  { %793 = vmatprep.mubr.bf16.mxu0 %v843_v20 }
  0x3a   :  { %794 = vmatmul.mubr.bf16.gmra.mrb[12].mxu0 %v844_v21 }
  0xf5   :  { %v783_v25 = vpop.f32.mrb[0].mxu0 }
  0xf6   :  { %v344_v26 = vadd.f32 %v783_v25, %v645_v24  ;;  %v221_v27 = vpop.f32.mrb[1].mxu0 }
  0xf7   :  { %v342_v28 = vadd.f32 %v645_v24, %v221_v27  ;;  %v784_v29 = vpop.f32.mrb[2].mxu0 }
  0xf8   :  { %v345_v30 = vadd.f32 %v784_v29, %v645_v24  ;;  %v224_v31 = vpop.f32.mrb[3].mxu0  ;;  %v360_v33 = vmax.f32 %v344_v26, 0.0 }
  0xf9   :  { %v343_v32 = vadd.f32 %v645_v24, %v224_v31  ;;  %v358_v35 = vmax.f32 %v342_v28, 0.0 }
  0xfa   :  { %v361_v34 = vmax.f32 %v345_v30, 0.0 }
  0xfb   :  { %v359_v36 = vmax.f32 %v343_v32, 0.0 }
  0xfc   :  { %v375_v37 = vpack.c.bf16 %v361_v34, %v360_v33 }
  0xfd   :  { %v787_v38 = vpop.f32.mrb[4].mxu0  ;;  %v374_v39 = vpack.c.bf16 %v359_v36, %v358_v35 }
  0xfe   :  { %v348_v40 = vadd.f32 %v787_v38, %v645_v24  ;;  %v237_v41 = vpop.f32.mrb[5].mxu0 }
  0xff   :  { %v346_v42 = vadd.f32 %v645_v24, %v237_v41  ;;  %v788_v43 = vpop.f32.mrb[6].mxu0  ;;  %813 = vmatprep.mubr.bf16.mxu1 %v374_v39 }
 0x100   :  { %v349_v44 = vadd.f32 %v788_v43, %v645_v24  ;;  %v240_v45 = vpop.f32.mrb[7].mxu0  ;;  %814 = vmatmul.mubr.bf16.vlgmr.msra.gmra.mrb[0].mxu1 %v375_v37  ;;  %v364_v47 = vmax.f32 %v348_v40, 0.0 }
 0x101   :  { %v347_v46 = vadd.f32 %v645_v24, %v240_v45  ;;  %v362_v49 = vmax.f32 %v346_v42, 0.0 }
 0x102   :  { %v365_v48 = vmax.f32 %v349_v44, 0.0 }
 0x103   :  { %v363_v50 = vmax.f32 %v347_v46, 0.0 }
 0x104   :  { %v377_v51 = vpack.c.bf16 %v365_v48, %v364_v47 }
 0x105   :  { %v376_v52 = vpack.c.bf16 %v363_v50, %v362_v49  ;;  %v791_v53 = vpop.f32.mrb[8].mxu0 }
 0x106   :  { %v352_v54 = vadd.f32 %v791_v53, %v645_v24  ;;  %v253_v55 = vpop.f32.mrb[9].mxu0 }
 0x107   :  { %v350_v56 = vadd.f32 %v645_v24, %v253_v55  ;;  %v792_v57 = vpop.f32.mrb[10].mxu0  ;;  %817 = vmatprep.mubr.bf16.mxu1 %v376_v52 }
 0x108   :  { %v353_v58 = vadd.f32 %v792_v57, %v645_v24  ;;  %v256_v59 = vpop.f32.mrb[11].mxu0  ;;  %818 = vmatmul.mubr.bf16.gmra.mrb[4].mxu1 %v377_v51  ;;  %v368_v61 = vmax.f32 %v352_v54, 0.0 }
 0x109   :  { %v351_v60 = vadd.f32 %v645_v24, %v256_v59  ;;  %v366_v63 = vmax.f32 %v350_v56, 0.0 }
 0x10a   :  { %v369_v62 = vmax.f32 %v353_v58, 0.0 }
 0x10b   :  { %v367_v0 = vmax.f32 %v351_v60, 0.0 }
 0x10c   :  { %v379_v1 = vpack.c.bf16 %v369_v62, %v368_v61 }
 0x10d   :  { %v378_v2 = vpack.c.bf16 %v367_v0, %v366_v63  ;;  %v795_v3 = vpop.f32.mrb[12].mxu0 }
 0x10e   :  { %v356_v4 = vadd.f32 %v795_v3, %v645_v24  ;;  %v269_v5 = vpop.f32.mrb[13].mxu0 }
 0x10f   :  { %v354_v6 = vadd.f32 %v645_v24, %v269_v5  ;;  %v796_v7 = vpop.f32.mrb[14].mxu0  ;;  %821 = vmatprep.mubr.bf16.mxu1 %v378_v2 }
 0x110   :  { %v357_v8 = vadd.f32 %v796_v7, %v645_v24  ;;  %v272_v9 = vpop.f32.mrb[15].mxu0  ;;  %822 = vmatmul.mubr.bf16.gmra.mrb[8].mxu1 %v379_v1  ;;  %v372_v11 = vmax.f32 %v356_v4, 0.0 }
 0x111   :  { %v355_v10 = vadd.f32 %v645_v24, %v272_v9  ;;  %v370_v13 = vmax.f32 %v354_v6, 0.0 }
 0x112   :  { %v373_v12 = vmax.f32 %v357_v8, 0.0 }
 0x113   :  { %v371_v14 = vmax.f32 %v355_v10, 0.0 }
 0x114   :  { %v381_v15 = vpack.c.bf16 %v373_v12, %v372_v11 }
 0x115   :  { %v380_v16 = vpack.c.bf16 %v371_v14, %v370_v13 }
 0x117   :  { %825 = vmatprep.mubr.bf16.mxu1 %v380_v16 }
 0x118   :  { %826 = vmatmul.mubr.bf16.gmra.mrb[12].mxu1 %v381_v15 }
 0x1d3   :  { %v815_v17 = vpop.f32.mrb[0].mxu1 }
 0x1d4   :  { %v480_v18 = vpop.f32.mrb[1].mxu1 }
 0x1d5   :  { %v816_v19 = vpop.f32.mrb[2].mxu1 }
 0x1d6   :  { %v694_v20 = vpack.c.bf16 %v816_v19, %v815_v17  ;;  %v483_v21 = vpop.f32.mrb[3].mxu1 }
 0x1d7   :  { %v689_v22 = vpack.c.bf16 %v483_v21, %v480_v18 }
 0x1d8   :  { %726 = vst [vmem:[%s981_s4 + $0x8] sm:$0xff] %v694_v20  }
 0x1d9   :  { %690 = vst [vmem:[%s981_s4] sm:$0xff] %v689_v22  }
 0x1db   :  { %v819_v23 = vpop.f32.mrb[4].mxu1 }
 0x1dc   :  { %v496_v24 = vpop.f32.mrb[5].mxu1 }
 0x1dd   :  { %v820_v25 = vpop.f32.mrb[6].mxu1 }
 0x1de   :  { %v704_v26 = vpack.c.bf16 %v820_v25, %v819_v23  ;;  %v499_v27 = vpop.f32.mrb[7].mxu1 }
 0x1df   :  { %v699_v28 = vpack.c.bf16 %v499_v27, %v496_v24 }
 0x1e0   :  { %728 = vst [vmem:[%s981_s4 + $0x18] sm:$0xff] %v704_v26  }
 0x1e1   :  { %727 = vst [vmem:[%s981_s4 + $0x10] sm:$0xff] %v699_v28  }
 0x1e3   :  { %v823_v29 = vpop.f32.mrb[8].mxu1 }
 0x1e4   :  { %v512_v30 = vpop.f32.mrb[9].mxu1 }
 0x1e5   :  { %v824_v31 = vpop.f32.mrb[10].mxu1 }
 0x1e6   :  { %v714_v32 = vpack.c.bf16 %v824_v31, %v823_v29  ;;  %v515_v33 = vpop.f32.mrb[11].mxu1 }
 0x1e7   :  { %v709_v34 = vpack.c.bf16 %v515_v33, %v512_v30 }
 0x1e8   :  { %730 = vst [vmem:[%s981_s4 + $0x28] sm:$0xff] %v714_v32  }
 0x1e9   :  { %729 = vst [vmem:[%s981_s4 + $0x20] sm:$0xff] %v709_v34  }
 0x1eb   :  { %v827_v35 = vpop.f32.mrb[12].mxu1 }
 0x1ec   :  { %v528_v36 = vpop.f32.mrb[13].mxu1 }
 0x1ed   :  { %v828_v37 = vpop.f32.mrb[14].mxu1 }
 0x1ee   :  { %v724_v38 = vpack.c.bf16 %v828_v37, %v827_v35  ;;  %v531_v39 = vpop.f32.mrb[15].mxu1 }
 0x1ef   :  { %v719_v40 = vpack.c.bf16 %v531_v39, %v528_v36 }
 0x1f0   :  { %732 = vst [vmem:[%s981_s4 + $0x38] sm:$0xff] %v724_v38  }
 0x1f1   :  { %731 = vst [vmem:[%s981_s4 + $0x30] sm:$0xff] %v719_v40  }

</bundles_post_ra>
